<compile_context>
chip_gen: v7x
topology: tpu7x:2x2x1
jax: 0.10.0
libtpu: 0.0.40
codegen_flags: <defaults>
</compile_context>

<pallas_src>
import functools

import jax
import jax.numpy as jnp
from jax.experimental import pallas as pl
from jax.experimental.pallas import tpu as pltpu

_LANES = 128        # lane width of a vreg
_SUBLANES = 8       # sublane count of a vreg
_MAX_TILE_ROWS = 1024  # 1024 x 128 x f32 = 512 KiB per buffer (safe on v5e/v6e/v7x)


def _logreg_kernel(wb_ref, x_ref, o_ref):
    # wb_ref: (1, 2) f32 in SMEM -> [weight, bias]; x_ref/o_ref: (tile_r, 128) in VMEM.
    w = wb_ref[0, 0]
    b = wb_ref[0, 1]
    z = x_ref[...] * w + b
    # sigmoid(z) == 0.5 * (1 + tanh(0.5 * z)): one EUP op, no divide on the VPU.
    o_ref[...] = 0.5 * (jnp.tanh(0.5 * z) + 1.0)


def _round_up(a: int, b: int) -> int:
    return ((a + b - 1) // b) * b


@functools.partial(jax.jit, static_argnames=())
def logistic_regression_forward(x, weight, bias):
    """x: (N, 1) f32; weight: (1, 1) f32; bias: (1,) f32 -> (N, 1) f32."""
    n = x.shape[0]

    # ---- lane-dense repacking: (N, 1) -> (rows, 128) zero-padded slab ----------
    x_flat = x.astype(jnp.float32).reshape(-1)

    rows0 = _round_up(pl.cdiv(n, _LANES), _SUBLANES)        # rows, multiple of 8
    tile_r = min(_MAX_TILE_ROWS, rows0)                     # tile rows (multiple of 8)
    rows = _round_up(rows0, tile_r)                         # rows, multiple of tile_r
    padded = rows * _LANES

    x_slab = jnp.zeros((padded,), jnp.float32).at[:n].set(x_flat).reshape(rows, _LANES)

    # Pack [w, b] into a single SMEM scalar array.
    wb = jnp.concatenate(
        [weight.reshape(1, 1).astype(jnp.float32), bias.reshape(1, 1).astype(jnp.float32)],
        axis=1,
    )  # (1, 2)

    grid = (rows // tile_r,)

    y_slab = pl.pallas_call(
        _logreg_kernel,
        out_shape=jax.ShapeDtypeStruct((rows, _LANES), jnp.float32),
        grid=grid,
        in_specs=[
            pl.BlockSpec(memory_space=pltpu.MemorySpace.SMEM),        # [w, b] scalars
            pl.BlockSpec((tile_r, _LANES), lambda i: (i, 0)),         # x tile in VMEM
        ],
        out_specs=pl.BlockSpec((tile_r, _LANES), lambda i: (i, 0)),   # y tile in VMEM
        compiler_params=pltpu.CompilerParams(
            dimension_semantics=("parallel",),                        # v7x: both TCs
        ),
        cost_estimate=pl.CostEstimate(
            flops=5 * padded,
            transcendentals=padded,
            bytes_accessed=8 * padded,                                # read + write f32
        ),
    )(wb, x_slab)

    # Slice the padded lanes back out; padded zeros never leak into the result.
    return y_slab.reshape(-1)[:n].reshape(n, 1)


if __name__ == "__main__":
    key = jax.random.PRNGKey(0)
    kw, kb = jax.random.split(key, 2)

    # Parameters matching torch.nn.Linear(1, 1) init range
    # (uniform in [-1, 1] since 1/sqrt(in_features) = 1).
    weight = jax.random.uniform(kw, (1, 1), jnp.float32, minval=-1.0, maxval=1.0)
    bias = jax.random.uniform(kb, (1,), jnp.float32, minval=-1.0, maxval=1.0)

    # Input consistent with the module's data: x = linspace(0, 10, 200) as (200, 1).
    n = 200
    x = jnp.linspace(0.0, 10.0, n, dtype=jnp.float32).reshape(n, 1)

    y = logistic_regression_forward(x, weight, bias)
    jax.block_until_ready(y)

    # Reference check in plain JAX.
    y_ref = jax.nn.sigmoid(x @ weight.T + bias)
    assert y.shape == (n, 1)
    assert jnp.allclose(y, y_ref, atol=1e-6), "mismatch vs reference"

    print("KERNEL_OK")
</pallas_src>

<mosaic_0001>
module attributes {stable_mosaic.version = 11 : i64} {
  func.func @_logreg_kernel(%arg0: i32, %arg1: memref<1x2xf32, #tpu.memory_space<smem>>, %arg2: memref<8x128xf32, #tpu.memory_space<vmem>>, %arg3: memref<8x128xf32, #tpu.memory_space<vmem>>) attributes {dimension_semantics = [#tpu.dimension_semantics<parallel>], iteration_bounds = array<i64: 1>, scalar_prefetch = 0 : i64, scratch_operands = 0 : i64, tpu.core_type = #tpu.core_type<tc>, window_params = [{transform_indices = @transform_0, window_bounds = array<i64: 1, 2>}, {transform_indices = @transform_1, window_bounds = array<i64: 8, 128>}, {transform_indices = @transform_2, window_bounds = array<i64: 8, 128>}]} {
    %c0 = arith.constant 0 : index
    %c0_0 = arith.constant 0 : index
    %0 = memref.load %arg1[%c0, %c0_0] : memref<1x2xf32, #tpu.memory_space<smem>>
    %c0_1 = arith.constant 0 : index
    %c1 = arith.constant 1 : index
    %1 = memref.load %arg1[%c0_1, %c1] : memref<1x2xf32, #tpu.memory_space<smem>>
    %c0_2 = arith.constant 0 : index
    %c0_3 = arith.constant 0 : index
    %2 = vector.load %arg2[%c0_2, %c0_3] : memref<8x128xf32, #tpu.memory_space<vmem>>, vector<8x128xf32>
    %3 = vector.broadcast %0 : f32 to vector<8x128xf32>
    %4 = arith.mulf %2, %3 : vector<8x128xf32>
    %5 = vector.broadcast %1 : f32 to vector<8x128xf32>
    %6 = arith.addf %4, %5 : vector<8x128xf32>
    %cst = arith.constant 5.000000e-01 : f32
    %7 = vector.broadcast %cst : f32 to vector<8x128xf32>
    %8 = arith.mulf %7, %6 : vector<8x128xf32>
    %9 = math.tanh %8 : vector<8x128xf32>
    %cst_4 = arith.constant 1.000000e+00 : f32
    %10 = vector.broadcast %cst_4 : f32 to vector<8x128xf32>
    %11 = arith.addf %9, %10 : vector<8x128xf32>
    %cst_5 = arith.constant 5.000000e-01 : f32
    %12 = vector.broadcast %cst_5 : f32 to vector<8x128xf32>
    %13 = arith.mulf %12, %11 : vector<8x128xf32>
    %c0_6 = arith.constant 0 : index
    %c0_7 = arith.constant 0 : index
    %14 = vector.load %arg3[%c0_6, %c0_7] : memref<8x128xf32, #tpu.memory_space<vmem>>, vector<8x128xf32>
    tpu.vector_store %arg3[%c0_6, %c0_7], %13 {strides = array<i32>} : memref<8x128xf32, #tpu.memory_space<vmem>>, vector<8x128xf32>,
    return
  }
  func.func @transform_0(%arg0: i32) -> (i32, i32) {
    %c0_i32 = arith.constant 0 : i32
    %c0_i32_0 = arith.constant 0 : i32
    %c0_i32_1 = arith.constant 0 : i32
    return %c0_i32, %c0_i32_0 : i32, i32
  }
  func.func @transform_1(%arg0: i32) -> (i32, i32) {
    %c0_i32 = arith.constant 0 : i32
    %c0_i32_0 = arith.constant 0 : i32
    return %arg0, %c0_i32 : i32, i32
  }
  func.func @transform_2(%arg0: i32) -> (i32, i32) {
    %c0_i32 = arith.constant 0 : i32
    %c0_i32_0 = arith.constant 0 : i32
    return %arg0, %c0_i32 : i32, i32
  }
}

</mosaic_0001>

<bundles_post_ra>
// kernel: logistic_regression_forward.1
= control target key start
LH: loop header
LB: loop body
LE: loop exit
PB: predicated region body
PF: predicated region fallthrough
CT: control target
= control target key end

     0   :  { %7 = vsyncpa [#allocation3], 0  ;;  %s84_s0 = inlined_call_operand.vmem [shape: f32[1,2], index: 0, kind: input, shape index: {}]   ;;  %s85_s1 = inlined_call_operand.vmem [shape: f32[8,128], index: 1, kind: input, shape index: {}]   ;;  %s86_s2 = inlined_call_operand.vmem [shape: f32[8,128], index: 2, kind: output, shape index: {}]  }
   0x1   :  { %s14_s11 = sshll.u32 %s84_s0, 4  ;;  %s15_s11 = int_to_ptr.vmem [resolvable:$true] %s14_s11 }
   0x2   :  { %s45_s12 = scalar_lea.vmem %s15_s11, 16  ;;  %p50_p1 = scmp.lt.s32.totalorder %s15_s11, %s15_s11 }
   0x3   :  { %p46_p0 = scmp.ne.s32.totalorder %s15_s11, %s45_s12  ;;  %p51_p2 = scmp.lt.s32.totalorder %s45_s12, %s45_s12 }
   0x5   :  { %p52_p3 = por %p51_p2, %p50_p1 }
   0x7   :  { %p53_p4 = pnand %p52_p3, %p46_p0 }
   0x9   :  { %56 = shalt.err (!%p53_p4)
}
   0xa   :  { %s59_s13 = smov [#allocation2]  }
   0xb   :  { %17 = dma.vmem_to_smem %s15_s11, 16, %s59_s13, [#allocation3]  }
   0xc   :  { %57 = dma.done.wait [#allocation3], 16  }
   0xd   :  { %58 = vsyncadd [#allocation3], 4294967280 }
   0xe   :  { %23 = sfence }
   0xf   :  { %s24_s14 = sld [smem:[#allocation2]]  ;;  %s41_s15 = sld [smem:[#allocation2 + $0x1]]  ;;  %v26_v0 = vld [vmem:[%s85_s1] sm:$0xff] }
  0x15   :  { %v27_v1 = vstv %s24_s14  ;;  %v29_v2 = vstv %s41_s15 }
  0x16   :  { %v28_v3 = vmul.f32 %v27_v1, %v26_v0 }
  0x18   :  { %v30_v4 = vadd.f32 %v29_v2, %v28_v3 }
  0x1a   :  { %v31_v5 = vmul.f32 0.5, %v30_v4 }
  0x1c   :  { %43 = vtanh.f32 %v31_v5 }
  0x26   :  { %v44_v6 = vpop.eup %43 }
  0x27   :  { %v33_v7 = vadd.f32 1.0, %v44_v6 }
  0x29   :  { %v34_v8 = vmul.f32 0.5, %v33_v7 }
  0x2b   :  { %35 = vst [vmem:[%s86_s2] sm:$0xff] %v34_v8 }
  0x2c   :  { %40 = vsyncpa [#allocation3], 1 }

</bundles_post_ra>
